<compile_context>
chip_gen: v6e
topology: v6e:2x2x1
jax: 0.10.0
libtpu: 0.0.40
codegen_flags: <defaults>
</compile_context>

<pallas_src>
import functools

import jax
import jax.numpy as jnp
from jax.experimental import pallas as pl
from jax.experimental.pallas import tpu as pltpu


def _label_smoothing_kernel(x_ref, tgt_ref, loss_ref, *,
                            confidence, smoothing, tile_b):
    """One grid step: tile_b rows of logits -> per-row smoothed NLL loss."""
    i = pl.program_id(0)

    x = x_ref[...].astype(jnp.float32)                       # (TB, C)
    c = x.shape[-1]

    # Whole target array is resident in VMEM (untiled); slice this tile's rows.
    row0 = pl.multiple_of(i * tile_b, tile_b)
    t = tgt_ref[pl.ds(row0, tile_b), :]                      # (TB, 1) int32

    # Numerically stable logsumexp pieces; never materialize full logprobs.
    m = jnp.max(x, axis=-1, keepdims=True)                   # (TB, 1)
    shifted = x - m                                          # (TB, C)
    lse = jnp.log(jnp.sum(jnp.exp(shifted), axis=-1, keepdims=True))  # (TB, 1)

    col = jax.lax.broadcasted_iota(jnp.int32, shifted.shape, 1)
    shifted_t = jnp.sum(jnp.where(col == t, shifted, 0.0),
                        axis=-1, keepdims=True)              # (TB, 1): shifted[r, t[r]]
    sum_shifted = jnp.sum(shifted, axis=-1, keepdims=True)   # (TB, 1)

    # nll      = lse - shifted_t
    # smooth   = lse - sum_shifted / C
    # loss_row = confidence*nll + smoothing*smooth
    loss_ref[...] = ((confidence + smoothing) * lse
                     - confidence * shifted_t
                     - (smoothing / c) * sum_shifted)


def _pick_tile_b(n, c, itemsize):
    """Largest row tile that keeps a double-buffered logits block well inside
    the scoped VMEM budget (sized for v7x's 64 MiB physical VMEM)."""
    row_align = 16 if itemsize < 4 else 8          # bf16 packs 2 rows / sublane
    per_buffer_budget = 2 * 1024 * 1024            # bytes of logits per buffer
    tile = per_buffer_budget // max(1, c * itemsize)
    tile = max(row_align, min(int(tile), 1024))
    tile = (tile // row_align) * row_align
    n_aligned = ((n + row_align - 1) // row_align) * row_align
    return min(tile, n_aligned)


def label_smoothing_loss(x, target, smoothing=0.0):
    """JAX/Pallas equivalent of LabelSmoothing.forward(x, target)."""
    n, c = x.shape
    confidence = 1.0 - smoothing

    itemsize = jnp.dtype(x.dtype).itemsize
    tile_b = _pick_tile_b(n, c, itemsize)
    num_tiles = pl.cdiv(n, tile_b)
    n_pad = num_tiles * tile_b

    if n_pad != n:
        x = jnp.pad(x, ((0, n_pad - n), (0, 0)))
        target = jnp.pad(target, (0, n_pad - n))
    tgt2d = target.astype(jnp.int32).reshape(n_pad, 1)

    kernel = functools.partial(
        _label_smoothing_kernel,
        confidence=float(confidence),   # Python floats -> static literals,
        smoothing=float(smoothing),     # no captured trace-time constants
        tile_b=int(tile_b),
    )

    # TODO(synk): for very large vocabularies (C >= 32K) add a second grid axis
    # over C with an online logsumexp instead of one (tile_b, C) block.
    per_row_loss = pl.pallas_call(
        kernel,
        out_shape=jax.ShapeDtypeStruct((n_pad, 1), jnp.float32),
        grid_spec=pltpu.PrefetchScalarGridSpec(
            num_scalar_prefetch=0,
            grid=(num_tiles,),
            in_specs=[
                # Logits tile, DMA'd in native dtype (bf16 halves HBM traffic).
                pl.BlockSpec((tile_b, c), lambda i: (i, 0)),
                # Whole target array, copied once into VMEM (N int32 is tiny).
                pl.BlockSpec(memory_space=pltpu.MemorySpace.VMEM),
            ],
            # Disjoint per-tile output slabs -> safe to shard across cores.
            out_specs=pl.BlockSpec((tile_b, 1), lambda i: (i, 0)),
        ),
        compiler_params=pltpu.CompilerParams(
            dimension_semantics=("parallel",),
            vmem_limit_bytes=48 * 1024 * 1024,   # headroom under v7x's 64 MiB
        ),
    )(x, tgt2d)

    # Drop padded rows and take the batch mean (matches loss.mean()).
    return jnp.sum(per_row_loss[:n, 0]) / n


def _reference(x, target, smoothing):
    confidence = 1.0 - smoothing
    logprobs = jax.nn.log_softmax(x.astype(jnp.float32), axis=-1)
    nll = -jnp.take_along_axis(
        logprobs, target[:, None].astype(jnp.int32), axis=-1)[:, 0]
    smooth = -jnp.mean(logprobs, axis=-1)
    return jnp.mean(confidence * nll + smoothing * smooth)


if __name__ == "__main__":
    key = jax.random.PRNGKey(0)
    smoothing = 0.1

    # Case 1: small f32 batch (batch divides the tile exactly).
    k1, k2, k3, k4 = jax.random.split(key, 4)
    n, c = 16, 32
    x = jax.random.normal(k1, (n, c), dtype=jnp.float32)
    tgt = jax.random.randint(k2, (n,), 0, c, dtype=jnp.int32)
    loss = jax.block_until_ready(label_smoothing_loss(x, tgt, smoothing=smoothing))
    ref = _reference(x, tgt, smoothing)
    assert jnp.allclose(loss, ref, atol=1e-5, rtol=1e-5), (loss, ref)

    # Case 2: ragged batch (exercises the padding / slicing path), bf16 input
    # (exercises native-dtype DMA; math is f32 in both kernel and reference).
    n2, c2 = 12, 40
    x2 = jax.random.normal(k3, (n2, c2), dtype=jnp.float32).astype(jnp.bfloat16)
    tgt2 = jax.random.randint(k4, (n2,), 0, c2, dtype=jnp.int32)
    loss2 = jax.block_until_ready(label_smoothing_loss(x2, tgt2, smoothing=smoothing))
    ref2 = _reference(x2, tgt2, smoothing)
    assert jnp.allclose(loss2, ref2, atol=1e-4, rtol=1e-4), (loss2, ref2)

    print("KERNEL_OK")
</pallas_src>

<mosaic_0001>
module attributes {stable_mosaic.version = 11 : i64} {
  func.func @_label_smoothing_kernel(%arg0: i32, %arg1: memref<16x32xf32, #tpu.memory_space<vmem>>, %arg2: memref<16x1xi32, #tpu.memory_space<vmem>>, %arg3: memref<16x1xf32, #tpu.memory_space<vmem>>) attributes {dimension_semantics = [#tpu.dimension_semantics<parallel>], iteration_bounds = array<i64: 1>, scalar_prefetch = 0 : i64, scratch_operands = 0 : i64, tpu.core_type = #tpu.core_type<tc>, window_params = [{transform_indices = @transform_0, window_bounds = array<i64: 16, 32>}, {pipeline_mode = #tpu.pipeline_mode<synchronous>, transform_indices = @transform_1, window_bounds = array<i64: 16, 1>}, {transform_indices = @transform_2, window_bounds = array<i64: 16, 1>}]} {
    %c0 = arith.constant 0 : index
    %c0_0 = arith.constant 0 : index
    %0 = vector.load %arg1[%c0, %c0_0] : memref<16x32xf32, #tpu.memory_space<vmem>>, vector<16x32xf32>
    %c16_i32 = arith.constant 16 : i32
    %1 = arith.muli %arg0, %c16_i32 : i32
    %2 = tpu.assume_multiple %1, 16 : i32
    %3 = arith.index_cast %2 : i32 to index
    %c0_1 = arith.constant 0 : index
    %4 = vector.load %arg2[%3, %c0_1] : memref<16x1xi32, #tpu.memory_space<vmem>>, vector<16x1xi32>
    %cst = arith.constant dense<0xFF800000> : vector<16xf32>
    %5 = vector.multi_reduction <maximumf>, %0, %cst [1] : vector<16x32xf32> to vector<16xf32>
    %6 = vector.shape_cast %5 : vector<16xf32> to vector<16x1xf32>
    %7 = vector.broadcast %6 : vector<16x1xf32> to vector<16x32xf32>
    %8 = arith.subf %0, %7 : vector<16x32xf32>
    %9 = math.exp %8 : vector<16x32xf32>
    %cst_2 = arith.constant dense<0.000000e+00> : vector<16xf32>
    %10 = vector.multi_reduction <add>, %9, %cst_2 [1] : vector<16x32xf32> to vector<16xf32>
    %11 = vector.shape_cast %10 : vector<16xf32> to vector<16x1xf32>
    %12 = math.log %11 : vector<16x1xf32>
    %13 = tpu.iota {dimensions = array<i32: 1>} : vector<16x32xi32>
    %14 = vector.broadcast %4 : vector<16x1xi32> to vector<16x32xi32>
    %15 = arith.cmpi eq, %13, %14 : vector<16x32xi32>
    %cst_3 = arith.constant 0.000000e+00 : f32
    %16 = vector.broadcast %cst_3 : f32 to vector<16x32xf32>
    %17 = arith.select %15, %8, %16 : vector<16x32xi1>, vector<16x32xf32>
    %cst_4 = arith.constant dense<0.000000e+00> : vector<16xf32>
    %18 = vector.multi_reduction <add>, %17, %cst_4 [1] : vector<16x32xf32> to vector<16xf32>
    %19 = vector.shape_cast %18 : vector<16xf32> to vector<16x1xf32>
    %cst_5 = arith.constant dense<0.000000e+00> : vector<16xf32>
    %20 = vector.multi_reduction <add>, %8, %cst_5 [1] : vector<16x32xf32> to vector<16xf32>
    %21 = vector.shape_cast %20 : vector<16xf32> to vector<16x1xf32>
    %cst_6 = arith.constant 1.000000e+00 : f32
    %22 = vector.broadcast %cst_6 : f32 to vector<16x1xf32>
    %23 = arith.mulf %22, %12 : vector<16x1xf32>
    %cst_7 = arith.constant 0.899999976 : f32
    %24 = vector.broadcast %cst_7 : f32 to vector<16x1xf32>
    %25 = arith.mulf %24, %19 : vector<16x1xf32>
    %26 = arith.subf %23, %25 : vector<16x1xf32>
    %cst_8 = arith.constant 3.125000e-03 : f32
    %27 = vector.broadcast %cst_8 : f32 to vector<16x1xf32>
    %28 = arith.mulf %27, %21 : vector<16x1xf32>
    %29 = arith.subf %26, %28 : vector<16x1xf32>
    %c0_9 = arith.constant 0 : index
    %c0_10 = arith.constant 0 : index
    %30 = vector.load %arg3[%c0_9, %c0_10] : memref<16x1xf32, #tpu.memory_space<vmem>>, vector<16x1xf32>
    tpu.vector_store %arg3[%c0_9, %c0_10], %29 {strides = array<i32>} : memref<16x1xf32, #tpu.memory_space<vmem>>, vector<16x1xf32>,
    return
  }
  func.func @transform_0(%arg0: i32) -> (i32, i32) {
    %c0_i32 = arith.constant 0 : i32
    %c0_i32_0 = arith.constant 0 : i32
    return %arg0, %c0_i32 : i32, i32
  }
  func.func @transform_1(%arg0: i32) -> (i32, i32) {
    %c0_i32 = arith.constant 0 : i32
    %c0_i32_0 = arith.constant 0 : i32
    %c0_i32_1 = arith.constant 0 : i32
    return %c0_i32, %c0_i32_0 : i32, i32
  }
  func.func @transform_2(%arg0: i32) -> (i32, i32) {
    %c0_i32 = arith.constant 0 : i32
    %c0_i32_0 = arith.constant 0 : i32
    return %arg0, %c0_i32 : i32, i32
  }
}

</mosaic_0001>

<bundles_post_ra>
// kernel: tpu_custom_call.1
= control target key start
LH: loop header
LB: loop body
LE: loop exit
PB: predicated region body
PF: predicated region fallthrough
CT: control target
= control target key end

     0   :  { %vm17_vm0 = vcmask 261120   ;;  %v90_v2 = vmov 0   ;;  %v40_v13 = vlaneseq  ;;  %vm72_vm3 = vcmask 7168   ;;  %s132_s0 = inlined_call_operand.vmem [shape: f32[16,32], index: 0, kind: input, shape index: {}]   ;;  %s133_s1 = inlined_call_operand.vmem [shape: s32[16,1], index: 1, kind: input, shape index: {}]   ;;  %s134_s2 = inlined_call_operand.vmem [shape: f32[16,1], index: 2, kind: output, shape index: {}]  }
   0x1   :  { %v11_v0 = vld [vmem:[%s132_s0] sm:$0xff]  ;;  %v12_v1 = vld [vmem:[%s132_s0 + $0x8] sm:$0xff]  ;;  %80 = vset.pattern.permute.xlu1 %v90_v2  ;;  %81 = vset.pattern.permute.xlu0 %v90_v2 }
   0x2   :  { %v15_v3 = vld [vmem:[%s133_s1] sm:$0xff]  ;;  %v18_v4 = vsel %vm17_vm0, %v11_v0, -inf  ;;  %v16_v5 = vld [vmem:[%s133_s1 + $0x8] sm:$0xff]  ;;  %v21_v6 = vsel %vm17_vm0, %v12_v1, -inf  ;;  %v41_v15 = vand.u32 127, %v40_v13 }
   0x3   :  { %43 = vperm.xlu1 %80, %v15_v3   ;;  %19 = vmax.xlane.f32.xlu0 %v18_v4 }
   0x7   :  { %46 = vperm.xlu1 %80, %v16_v5   ;;  %22 = vmax.xlane.f32.xlu0 %v21_v6 }
  0x7e   :  { %v44_v14 = vpop.permute.xlu1 %43 }
  0x7f   :  { %vm48_vm1 = vcmp.eq.s32.totalorder %v41_v15, %v44_v14 }
  0x82   :  { %v47_v17 = vpop.permute.xlu1 %46 }
  0x83   :  { %vm49_vm2 = vcmp.eq.s32.totalorder %v41_v15, %v47_v17 }
  0x8c   :  { %v20_v7 = vpop.xlane.xlu0 %19 }
  0x8d   :  { %v24_v8 = vsub.f32 %v11_v0, %v20_v7 }
  0x8f   :  { %v26_v9 = vmul.f32 1.442695, %v24_v8  ;;  %v50_v19 = vsel %vm48_vm1, %v24_v8, 0.0  ;;  %v58_v25 = vsel %vm17_vm0, %v24_v8, 0.0 }
  0x90   :  { %v23_v10 = vpop.xlane.xlu0 %22  ;;  %v52_v21 = vsel %vm17_vm0, %v50_v19, 0.0 }
  0x91   :  { %82 = vpow2.f32 %v26_v9  ;;  %v25_v11 = vsub.f32 %v12_v1, %v23_v10 }
  0x93   :  { %v28_v12 = vmul.f32 1.442695, %v25_v11  ;;  %v51_v23 = vsel %vm49_vm2, %v25_v11, 0.0  ;;  %v61_v26 = vsel %vm17_vm0, %v25_v11, 0.0 }
  0x94   :  { %v55_v24 = vsel %vm17_vm0, %v51_v23, 0.0 }
  0x95   :  { %84 = vpow2.f32 %v28_v12 }
  0x9e   :  { %v83_v16 = vpop.eup %82 }
  0x9f   :  { %v30_v18 = vsel %vm17_vm0, %v83_v16, 0.0 }
  0xa0   :  { %31 = vadd.xlane.f32.xlu0 %v30_v18 }
  0xa2   :  { %v85_v20 = vpop.eup %84 }
  0xa3   :  { %v33_v22 = vsel %vm17_vm0, %v85_v20, 0.0 }
  0xa4   :  { %53 = vadd.xlane.f32.xlu0 %v52_v21  ;;  %34 = vadd.xlane.f32.xlu1 %v33_v22 }
  0xa8   :  { %56 = vadd.xlane.f32.xlu0 %v55_v24 }
  0xac   :  { %59 = vadd.xlane.f32.xlu0 %v58_v25 }
  0xb0   :  { %62 = vadd.xlane.f32.xlu0 %v61_v26 }
 0x129   :  { %v32_v27 = vpop.xlane.xlu0 %31 }
 0x12a   :  { %86 = vlog2.f32 %v32_v27 }
 0x12d   :  { %v35_v28 = vpop.xlane.xlu1 %34  ;;  %v54_v29 = vpop.xlane.xlu0 %53 }
 0x12e   :  { %88 = vlog2.f32 %v35_v28  ;;  %v64_v34 = vmul.f32 0.9, %v54_v29 }
 0x131   :  { %v57_v30 = vpop.xlane.xlu0 %56 }
 0x132   :  { %v65_v40 = vmul.f32 0.9, %v57_v30 }
 0x135   :  { %v60_v31 = vpop.xlane.xlu0 %59 }
 0x136   :  { %v68_v36 = vmul.f32 0.003125, %v60_v31 }
 0x137   :  { %v87_v32 = vpop.eup %86 }
 0x138   :  { %v37_v33 = vmul.f32 0.6931472, %v87_v32 }
 0x139   :  { %v63_v38 = vpop.xlane.xlu0 %62 }
 0x13a   :  { %v66_v35 = vsub.f32 %v37_v33, %v64_v34  ;;  %v69_v43 = vmul.f32 0.003125, %v63_v38 }
 0x13b   :  { %v89_v37 = vpop.eup %88 }
 0x13c   :  { %v39_v39 = vmul.f32 0.6931472, %v89_v37  ;;  %v70_v41 = vsub.f32 %v66_v35, %v68_v36 }
 0x13e   :  { %v67_v42 = vsub.f32 %v39_v39, %v65_v40  ;;  %73 = vst.msk [vmem:[%s134_s2] sm:$0xff] %vm72_vm3, %v70_v41 }
 0x140   :  { %v71_v44 = vsub.f32 %v67_v42, %v69_v43 }
 0x142   :  { %74 = vst.msk [vmem:[%s134_s2 + $0x8] sm:$0xff] %vm72_vm3, %v71_v44 }

</bundles_post_ra>
